<compile_context>
chip_gen: v7x
topology: tpu7x:2x2x1
jax: 0.10.0
libtpu: 0.0.40
codegen_flags: <defaults>
</compile_context>

<pallas_src>
import jax
import jax.numpy as jnp
from jax.experimental import pallas as pl
from jax.experimental.pallas import tpu as pltpu

_VMEM_LIMIT = 32 * 1024 * 1024
_RESIDENT_HMAX = 1024          # weight-resident path while H_pad^2 f32 <= 4 MiB


def _round_up(x, m):
    return ((x + m - 1) // m) * m


def _pick_h_pad(h):
    # 128-aligned for tiny dims; 256-aligned otherwise (full 2x256 MXU on v6e/v7x).
    return _round_up(h, 128) if h <= 128 else _round_up(h, 256)


def _pad_cols(x, h_pad):
    h = x.shape[-1]
    return x if h == h_pad else jnp.pad(x, ((0, 0), (0, h_pad - h)))


def _row_tiling(n, tile_max):
    """Rows padded to a multiple of 8; waste <= 8*grid rows; >=2 steps when possible."""
    n8 = _round_up(max(n, 1), 8)
    grid = pl.cdiv(n8, tile_max)
    if n8 >= 16:
        grid = max(grid, 2)          # keep both v7x TensorCores busy
    tile = _round_up(pl.cdiv(n8, grid), 8)
    return grid, tile, grid * tile


# ----------------------------------------------------------------------------
# Pallas kernel 1a: RGCN self-loop, weight-resident path (typical H).
#   node_repr = h + h @ loop_weight   -- h tile read once, residual fused.
# ----------------------------------------------------------------------------
def _self_loop_resident_kernel(h_ref, w_ref, o_ref):
    h = h_ref[...]
    acc = jnp.dot(h, w_ref[...], preferred_element_type=jnp.float32)
    o_ref[...] = (acc + h.astype(jnp.float32)).astype(o_ref.dtype)


# ----------------------------------------------------------------------------
# Pallas kernel 1b: K-tiled fallback for very large H (tn == tk required so the
# residual can be fused at k == j; no second h input).
# ----------------------------------------------------------------------------
def _self_loop_ktiled_kernel(h_ref, w_ref, o_ref, acc_ref):
    j = pl.program_id(1)
    k = pl.program_id(2)

    @pl.when(k == 0)
    def _():
        acc_ref[...] = jnp.zeros_like(acc_ref)

    @pl.when(k == j)  # valid because tn == tk and j/k tile H identically
    def _():
        acc_ref[...] += h_ref[...].astype(jnp.float32)

    acc_ref[...] += jnp.dot(
        h_ref[...], w_ref[...], preferred_element_type=jnp.float32
    )

    @pl.when(k == pl.num_programs(2) - 1)
    def _():
        o_ref[...] = acc_ref[...].astype(o_ref.dtype)


def rgcn_layer_forward(h, loop_weight, *, tm_max=1024):
    """RGCNLayer forward (self-loop path):  h + h @ loop_weight.

    Expects h of shape (N, H_pad) and loop_weight of shape (H_pad, H_pad) with the
    feature dim already zero-padded/aligned (done once at param-prep time).
    Returns (N, H_pad); padded columns stay zero.
    """
    n, h_pad = h.shape
    assert loop_weight.shape == (h_pad, h_pad) and h_pad % 128 == 0

    grid_m, tm, n_pad = _row_tiling(n, tm_max)
    h_p = h if n_pad == n else jnp.pad(h, ((0, n_pad - n), (0, 0)))

    if h_pad <= _RESIDENT_HMAX:
        out = pl.pallas_call(
            _self_loop_resident_kernel,
            out_shape=jax.ShapeDtypeStruct((n_pad, h_pad), h.dtype),
            grid_spec=pltpu.PrefetchScalarGridSpec(
                num_scalar_prefetch=0,
                grid=(grid_m,),
                in_specs=[
                    pl.BlockSpec((tm, h_pad), lambda i: (i, 0)),       # h row tile
                    pl.BlockSpec((h_pad, h_pad), lambda i: (0, 0)),    # resident weight
                ],
                out_specs=pl.BlockSpec((tm, h_pad), lambda i: (i, 0)),
            ),
            compiler_params=pltpu.CompilerParams(
                dimension_semantics=("parallel",),
                vmem_limit_bytes=_VMEM_LIMIT,
            ),
        )(h_p, loop_weight)
    else:
        tn = tk = 256                                   # tn == tk: residual fuse invariant
        assert h_pad % tn == 0
        out = pl.pallas_call(
            _self_loop_ktiled_kernel,
            out_shape=jax.ShapeDtypeStruct((n_pad, h_pad), h.dtype),
            grid_spec=pltpu.PrefetchScalarGridSpec(
                num_scalar_prefetch=0,
                grid=(grid_m, h_pad // tn, h_pad // tk),
                in_specs=[
                    pl.BlockSpec((tm, tk), lambda i, j, k: (i, k)),     # h (LHS / residual)
                    pl.BlockSpec((tk, tn), lambda i, j, k: (k, j)),     # weight tile
                ],
                out_specs=pl.BlockSpec((tm, tn), lambda i, j, k: (i, j)),
                scratch_shapes=[pltpu.VMEM((tm, tn), jnp.float32)],
            ),
            compiler_params=pltpu.CompilerParams(
                dimension_semantics=("parallel", "parallel", "arbitrary"),
                vmem_limit_bytes=_VMEM_LIMIT,
            ),
        )(h_p, loop_weight)

    return out[:n, :]


# ----------------------------------------------------------------------------
# Pallas kernel 2: DistMult score  sum(s * r * o, axis=feature)  -> [T]
# Row-major (tq, H_pad) tiles (plain row gathers in XLA, no transposed copies),
# f32 multiply + lane reduce; the tiny (tq, 1) output is negligible vs input DMA.
# ----------------------------------------------------------------------------
def _distmult_kernel(s_ref, r_ref, o_ref, score_ref):
    prod = (
        s_ref[...].astype(jnp.float32)
        * r_ref[...].astype(jnp.float32)
        * o_ref[...].astype(jnp.float32)
    )
    score_ref[...] = jnp.sum(prod, axis=-1, keepdims=True)  # (tq, 1)


def calc_score(embedding_padded, w_relation_padded, triplets, *, tq_max=2048):
    t = triplets.shape[0]
    h_pad = embedding_padded.shape[1]
    assert w_relation_padded.shape[1] == h_pad

    # Cap the triplet tile so 3 double-buffered (tq, H_pad) f32 inputs stay ~<=16 MiB.
    vmem_budget = 16 * 1024 * 1024
    tq_cap = max(8, (vmem_budget // (3 * 2 * h_pad * 4)) // 128 * 128)
    grid_t, tq, t_pad = _row_tiling(t, min(tq_max, tq_cap))

    idx = triplets if t_pad == t else jnp.pad(triplets, ((0, t_pad - t), (0, 0)))
    # Row gathers are XLA glue (data-dependent indexing); no transposes materialized.
    s = jnp.take(embedding_padded, idx[:, 0], axis=0)   # (t_pad, h_pad)
    r = jnp.take(w_relation_padded, idx[:, 1], axis=0)
    o = jnp.take(embedding_padded, idx[:, 2], axis=0)

    score = pl.pallas_call(
        _distmult_kernel,
        out_shape=jax.ShapeDtypeStruct((t_pad, 1), jnp.float32),
        grid_spec=pltpu.PrefetchScalarGridSpec(
            num_scalar_prefetch=0,
            grid=(grid_t,),
            in_specs=[
                pl.BlockSpec((tq, h_pad), lambda i: (i, 0)),
                pl.BlockSpec((tq, h_pad), lambda i: (i, 0)),
                pl.BlockSpec((tq, h_pad), lambda i: (i, 0)),
            ],
            out_specs=pl.BlockSpec((tq, 1), lambda i: (i, 0)),
        ),
        compiler_params=pltpu.CompilerParams(
            dimension_semantics=("parallel",),
            vmem_limit_bytes=_VMEM_LIMIT,
        ),
    )(s, r, o)
    return score[:t, 0]  # matches torch.sum(..., dim=1) -> shape [T]


# ----------------------------------------------------------------------------
# Parameter prep (pad feature dims ONCE, not per forward) + LinkPredict forward
# ----------------------------------------------------------------------------
def prepare_params(embedding_table, loop_weight, w_relation):
    h_dim = embedding_table.shape[1]
    h_pad = _pick_h_pad(h_dim)
    return {
        "h_dim": h_dim,
        "embedding_table": _pad_cols(embedding_table, h_pad),
        "loop_weight": jnp.pad(
            loop_weight, ((0, h_pad - h_dim), (0, h_pad - h_dim))
        ),
        "w_relation": _pad_cols(w_relation, h_pad),
    }


def link_predict_forward(node_ids, params):
    h = params["embedding_table"][node_ids]            # EmbeddingLayer (gather, glue)
    return rgcn_layer_forward(h, params["loop_weight"])  # (N, H_pad), padded cols = 0


# ----------------------------------------------------------------------------
# Deterministic parameter init (matches shapes / init schemes from __init__)
# ----------------------------------------------------------------------------
def xavier_uniform_relu(key, shape):
    fan_in, fan_out = shape[0], shape[1]
    gain = jnp.sqrt(2.0)  # calculate_gain('relu')
    bound = gain * jnp.sqrt(6.0 / (fan_in + fan_out))
    return jax.random.uniform(key, shape, jnp.float32, -bound, bound)


if __name__ == "__main__":
    num_nodes, h_dim, num_rels, T = 64, 32, 4, 16

    key = jax.random.PRNGKey(0)
    k_emb, k_loop, k_rel, k_trip = jax.random.split(key, 4)

    # nn.Embedding default init: N(0, 1)
    embedding_table = jax.random.normal(k_emb, (num_nodes, h_dim), jnp.float32)
    # RGCNLayer.loop_weight: xavier_uniform(gain=relu), shape (in_feat, out_feat)
    loop_weight = xavier_uniform_relu(k_loop, (h_dim, h_dim))
    # LinkPredict.w_relation: xavier_uniform(gain=relu), shape (num_rels, h_dim)
    w_relation = xavier_uniform_relu(k_rel, (num_rels, h_dim))

    node_ids = jnp.arange(num_nodes, dtype=jnp.int32)
    triplets = jnp.stack(
        [
            jax.random.randint(jax.random.fold_in(k_trip, 0), (T,), 0, num_nodes),
            jax.random.randint(jax.random.fold_in(k_trip, 1), (T,), 0, num_rels),
            jax.random.randint(jax.random.fold_in(k_trip, 2), (T,), 0, num_nodes),
        ],
        axis=1,
    ).astype(jnp.int32)

    # --- run kernels ---
    params = prepare_params(embedding_table, loop_weight, w_relation)
    emb_pad = link_predict_forward(node_ids, params)        # (N, H_pad)
    score = calc_score(emb_pad, params["w_relation"], triplets)
    embedding = emb_pad[:, :h_dim]
    jax.block_until_ready((embedding, score))

    # --- pure-JAX reference check ---
    h0 = embedding_table[node_ids]
    emb_ref = h0 + h0 @ loop_weight               # node_repr = h + loop_message
    s_ref = emb_ref[triplets[:, 0]]
    r_ref = w_relation[triplets[:, 1]]
    o_ref = emb_ref[triplets[:, 2]]
    score_ref = jnp.sum(s_ref * r_ref * o_ref, axis=1)

    assert embedding.shape == (num_nodes, h_dim)
    assert score.shape == (T,)
    assert jnp.allclose(embedding, emb_ref, atol=1e-5, rtol=1e-5)
    assert jnp.allclose(score, score_ref, atol=1e-4, rtol=1e-4)

    print("KERNEL_OK")
</pallas_src>

<mosaic_0001>
module attributes {stable_mosaic.version = 11 : i64} {
  func.func @_self_loop_resident_kernel(%arg0: i32, %arg1: memref<32x128xf32, #tpu.memory_space<vmem>>, %arg2: memref<128x128xf32, #tpu.memory_space<vmem>>, %arg3: memref<32x128xf32, #tpu.memory_space<vmem>>) attributes {dimension_semantics = [#tpu.dimension_semantics<parallel>], iteration_bounds = array<i64: 2>, scalar_prefetch = 0 : i64, scratch_operands = 0 : i64, tpu.core_type = #tpu.core_type<tc>, window_params = [{transform_indices = @transform_0, window_bounds = array<i64: 32, 128>}, {pipeline_mode = #tpu.pipeline_mode<synchronous>, transform_indices = @transform_1, window_bounds = array<i64: 128, 128>}, {transform_indices = @transform_2, window_bounds = array<i64: 32, 128>}]} {
    %c0 = arith.constant 0 : index
    %c0_0 = arith.constant 0 : index
    %0 = vector.load %arg1[%c0, %c0_0] : memref<32x128xf32, #tpu.memory_space<vmem>>, vector<32x128xf32>
    %c0_1 = arith.constant 0 : index
    %c0_2 = arith.constant 0 : index
    %1 = vector.load %arg2[%c0_1, %c0_2] : memref<128x128xf32, #tpu.memory_space<vmem>>, vector<128x128xf32>
    %cst = arith.constant dense<0.000000e+00> : vector<32x128xf32>
    %2 = tpu.matmul %0, %1, %cst {dimension_numbers = #tpu.dot_dimension_numbers<[1], [0], [0], [1], [0, 0, 1, 1], [], []>} : vector<32x128xf32>, vector<128x128xf32>, vector<32x128xf32> -> vector<32x128xf32>
    %3 = arith.addf %2, %0 : vector<32x128xf32>
    %c0_3 = arith.constant 0 : index
    %c0_4 = arith.constant 0 : index
    %4 = vector.load %arg3[%c0_3, %c0_4] : memref<32x128xf32, #tpu.memory_space<vmem>>, vector<32x128xf32>
    tpu.vector_store %arg3[%c0_3, %c0_4], %3 {strides = array<i32>} : memref<32x128xf32, #tpu.memory_space<vmem>>, vector<32x128xf32>,
    return
  }
  func.func @transform_0(%arg0: i32) -> (i32, i32) {
    %c0_i32 = arith.constant 0 : i32
    %c0_i32_0 = arith.constant 0 : i32
    return %arg0, %c0_i32 : i32, i32
  }
  func.func @transform_1(%arg0: i32) -> (i32, i32) {
    %c0_i32 = arith.constant 0 : i32
    %c0_i32_0 = arith.constant 0 : i32
    %c0_i32_1 = arith.constant 0 : i32
    return %c0_i32, %c0_i32_0 : i32, i32
  }
  func.func @transform_2(%arg0: i32) -> (i32, i32) {
    %c0_i32 = arith.constant 0 : i32
    %c0_i32_0 = arith.constant 0 : i32
    return %arg0, %c0_i32 : i32, i32
  }
}

</mosaic_0001>

<bundles_post_ra>
// kernel: tpu_custom_call.1
= control target key start
LH: loop header
LB: loop body
LE: loop exit
PB: predicated region body
PF: predicated region fallthrough
CT: control target
= control target key end

     0   :  { %7 = vsyncpa [#allocation3], 0  ;;  %s939_s0 = inlined_call_operand.hbm [shape: f32[64,128], index: 0, kind: input, shape index: {}]   ;;  %s940_s1 = inlined_call_operand.hbm [shape: f32[128,128], index: 1, kind: input, shape index: {}]   ;;  %s941_s2 = inlined_call_operand.hbm [shape: f32[64,128], index: 2, kind: output, shape index: {}]  }
   0x1   :  { %9 = vsyncpa [#allocation3 + $0x1], 0 }
   0x2   :  { %10 = vsyncpa [#allocation6], 0 }
   0x3   :  { %11 = vsyncpa [#allocation4], 0 }
   0x4   :  { %13 = vsyncpa [#allocation4 + $0x1], 0  ;;  %s722_s9 = smov 0   ;;  %s724_s10 = smov 0  }
   0x5   :  { %s726_s11 = smov 0   ;;  %s728_s12 = smov 0  }
   0x6 LB: > { %s743_s13 = sadd.s32 4294967295, %s698_s12   ;;  %s385_s14 = sadd.s32 4294967294, %s698_s12   ;;  %s698_s12 = sphi %s728_s12, %s961_s12   ;;  %s694_s11 = sphi %s726_s11, %s960_s11   ;;  %s690_s10 = sphi %s724_s10, %s959_s10   ;;  %s686_s9 = sphi %s722_s9, %s958_s9  }
   0x7   : > { %p39_p0 = scmp.ne.s32.totalorder %s690_s10, %s686_s9  ;;  %p942_p1 = scmp.eq.s32.totalorder %s743_s13, 0 }
   0x8   : > { %p90_p3 = scmp.eq.s32.totalorder %s385_s14, 1  ;;  %p386_p5 = scmp.ge.s32.totalorder %s698_s12, 1 }
   0x9   : > { %p752_p4 = por %p942_p1, %p39_p0  ;;  %p97_p7 = scmp.lt.s32.totalorder %s698_s12, 3 }
   0xa   : > { %p757_p6 = por %p90_p3, %p39_p0  ;;  %s700_s18 = smov [#allocation5]  }
   0xb   : > { %s945_s15 = scalar_select %p752_p4, 1, 0 }
   0xc   : > { %s946_s16 = scalar_select %p757_p6, 1, 0 }
   0xd   : > { %p762_p8 = pnand %p386_p5, %p97_p7  ;;  %s109_s19 = sshll.u32 %s700_s18, 4  ;;  %s766_s19 = int_to_ptr.vmem [resolvable:$true] %s109_s19 }
   0xe   : > { %s778_s21 = sadd.s32 1, %s698_s12   ;;  %s26_s22 = sadd.s32 1, %s694_s11 }
   0xf   : > { %s947_s17 = scalar_select %p762_p8, 1, 0 }
  0x10   : > { %p517_p9 = pneg %p762_p8  ;;  %s23_s23 = ssub.s32 %s698_s12, %s778_s21 }
  0x11   : > { %s570_s26 = scalar_lea.hbm %s940_s1, 2048 }
  0x12   : > { %p773_p11 = pnand %p517_p9, %p942_p1  ;;  %p571_p12 = scmp.ne.s32.totalorder %s940_s1, %s570_s26 }
  0x13   : > { %p577_p5 = scmp.lt.u32.totalorder %s570_s26, %s940_s1 }
  0x14   : > { %p572_p13 = pneg %p773_p11 }
  0x16   : > { %p573_p0 = pnand %p572_p13, %p571_p12 }
  0x18   : > { %p574_p3 = pneg %p573_p0 }
  0x1a   : > { %p579_p7 = pnand %p577_p5, %p574_p3 }
  0x1c   : > { %582 = shalt.err (!%p579_p7)
}
  0x1d   : > { %s583_s3 = scalar_lea.vmem %s766_s19, 2048  ;;  %p591_p2 = scmp.lt.s32.totalorder %s766_s19, %s766_s19 }
  0x1e   : > { %p584_p9 = scmp.ne.s32.totalorder %s766_s19, %s583_s3  ;;  %p592_p6 = scmp.lt.s32.totalorder %s583_s3, %s583_s3 }
  0x20   : > { %p586_p10 = pnand %p584_p9, %p572_p13  ;;  %p593_p4 = por %p592_p6, %p591_p2 }
  0x22   : > { %p587_p1 = pneg %p586_p10 }
  0x24   : > { %p594_p8 = pnand %p593_p4, %p587_p1 }
  0x26   : > { %597 = shalt.err (!%p594_p8)
}
  0x27   : > { %s701_s4 = smov 128   ;;  %s702_s5 = smov 8  }
  0x28   : > { %520 = dma.hbm_to_vmem [thread:$0]  (!%p773_p11), %s940_s1, 2048, %s766_s19, [#allocation6], %s701_s4, %s701_s4, %s702_s5  }
  0x29   : > { %p24_p1 = scmp.eq.s32.totalorder %s23_s23, 0  ;;  %p33_p2 = scmp.ne.s32.totalorder %s694_s11, %s690_s10 }
  0x2a   : > { %p34_p4 = scmp.eq.s32.totalorder %s698_s12, 0  ;;  %p530_p6 = scmp.lt.s32.totalorder %s698_s12, 2 }
  0x2b   : > { %s812_s8 = scalar_select %p24_p1, %s694_s11, %s26_s22  }
  0x2c   : > { %p35_p8 = por %p34_p4, %p33_p2  ;;  %p949_p10 = scmp.eq.s32.totalorder %s743_s13, 1 }
  0x2d   : > { %s123_s18 = sand.u32 1, %s694_s11   ;;  %s401_s20 = sshll.u32 %s698_s12, 9 }
  0x2e   : > { %p816_p12 = por %p949_p10, %p33_p2  ;;  %s389_s24 = sshll.u32 %s123_s18, 5 }
  0x2f   : > { %s825_s27 = scalar_lea.hbm %s939_s0, %s401_s20  ;;  %s127_s19 = scalar_lea.vmem [#allocation2], %s389_s24 }
  0x30   : > { %s134_s22 = sshll.u32 %s127_s19, 4  ;;  %p827_p11 = pnand %p530_p6, %p35_p8  ;;  %s831_s22 = int_to_ptr.vmem [resolvable:$true] %s134_s22 }
  0x31   : > { %s833_s28 = scalar_lea.sflag [#allocation3], %s123_s18  ;;  %s598_s29 = scalar_lea.hbm %s825_s27, 512 }
  0x32   : > { %p599_p13 = scmp.ne.s32.totalorder %s825_s27, %s598_s29  ;;  %p600_p0 = pneg %p827_p11 }
  0x33   : > { %s603_s6 = scalar_lea.hbm %s939_s0, 1024  ;;  %p604_p7 = scmp.lt.u32.totalorder %s825_s27, %s939_s0 }
  0x34   : > { %p601_p3 = pnand %p600_p0, %p599_p13  ;;  %p605_p9 = scmp.lt.u32.totalorder %s603_s6, %s598_s29 }
  0x35   : > { %p607_p2 = scmp.lt.u32.totalorder %s598_s29, %s825_s27 }
  0x36   : > { %p602_p5 = pneg %p601_p3  ;;  %p606_p1 = por %p605_p9, %p604_p7 }
  0x38   : > { %p608_p4 = por %p607_p2, %p606_p1 }
  0x3a   : > { %p609_p6 = pnand %p608_p4, %p602_p5 }
  0x3c   : > { %612 = shalt.err (!%p609_p6)
}
  0x3d   : > { %s613_s18 = scalar_lea.vmem %s831_s22, 512  ;;  %s703_s24 = smov [#allocation2]  }
  0x3e   : > { %p614_p8 = scmp.ne.s32.totalorder %s831_s22, %s613_s18  ;;  %s618_s25 = sshll.u32 %s703_s24, 4  ;;  %s619_s25 = int_to_ptr.vmem [resolvable:$false] %s618_s25 }
  0x3f   : > { %s620_s26 = scalar_lea.vmem %s619_s25, 1024  ;;  %p621_p3 = scmp.lt.s32.totalorder %s831_s22, %s619_s25 }
  0x40   : > { %p616_p10 = pnand %p614_p8, %p600_p0  ;;  %p622_p7 = scmp.lt.s32.totalorder %s620_s26, %s613_s18 }
  0x42   : > { %p617_p13 = pneg %p616_p10  ;;  %p623_p9 = por %p622_p7, %p621_p3 }
  0x44   : > { %p624_p1 = pnand %p623_p9, %p617_p13 }
  0x46   : > { %627 = shalt.err (!%p624_p1)
}
  0x47   : > { %524 = dma.hbm_to_vmem [thread:$0]  (!%p827_p11), %s825_s27, 512, %s831_s22, %s833_s28, %s701_s4, %s701_s4, %s702_s5  }
  0x48   : > { %p952_p0 = scmp.ne.s32.totalorder %s947_s17, 0 }
  0x49   : > { %s867_s19 = sand.u32 (!%p952_p0), 1, %s690_s10   ;;  %p953_p5 = scmp.ne.s32.totalorder (!%p952_p0), %s945_s15, 0 }
  0x4a   : > { %146 = sbr.rel (%p952_p0) target bundleno = 350 (0x15e), region = 28  ;;  %s393_s29 = sshll.u32 (!%p952_p0), %s867_s19, 5 }
  0x4b   : > { %s149_s30 = scalar_lea.sflag (!%p952_p0), [#allocation3], %s867_s19  ;;  %s873_s23 = scalar_lea.vmem (!%p952_p0), [#allocation2], %s393_s29 }
  0x51   : > { %673 = dma.done.wait (%p953_p5), %s149_s30, 512  }
  0x52   : > { %675 = vsyncadd (%p953_p5), %s149_s30, 4294966784  ;;  %p954_p11 = scmp.eq.s32.totalorder %s743_s13, 0 }
  0x54   : > { %677 = dma.done.wait (%p954_p11), [#allocation6], 2048   ;;  %p955_p2 = pmov %p954_p11 }
  0x55   : > { %v183_v0 = vld [vmem:[#allocation5] sm:$0xff]  ;;  %v184_v1 = vld [vmem:[#allocation5 + $0x8] sm:$0xff]  ;;  %v185_v2 = vld [vmem:[#allocation5 + $0x10] sm:$0xff]  ;;  %s176_s15 = scalar_lea.vmem [#allocation7], %s393_s29  ;;  %s402_s4 = sshll.u32 %s743_s13, 9 }
  0x56   : > { %679 = vsyncadd (%p955_p2), [#allocation6], 4294965248  ;;  %v461_v3 = vpack.c.bf16 %v184_v1, %v183_v0  ;;  %v186_v4 = vld [vmem:[#allocation5 + $0x18] sm:$0xff]  ;;  %v187_v6 = vld [vmem:[#allocation5 + $0x20] sm:$0xff]  ;;  %s302_s17 = sshll.u32 %s176_s15, 4  ;;  %s895_s22 = scalar_lea.hbm %s941_s2, %s402_s4  ;;  %s890_s17 = int_to_ptr.vmem [resolvable:$true] %s302_s17 }
  0x57   : > { %v465_v5 = vpack.c.bf16 %v186_v4, %v185_v2  ;;  %v188_v7 = vld [vmem:[#allocation5 + $0x28] sm:$0xff]  ;;  %v179_v9 = vld [vmem:[%s873_s23] sm:$0xff]  ;;  %v189_v10 = vld [vmem:[#allocation5 + $0x30] sm:$0xff]  ;;  %s289_s13 = scalar_lea.sflag [#allocation4], %s867_s19  ;;  %s628_s28 = scalar_lea.vmem %s890_s17, 512 }
  0x58   : > { %462 = vmatprep.subr.bf16.mxu0 %v461_v3  ;;  %493 = vmatprep.subr.bf16.mxu1 %v461_v3  ;;  %v469_v8 = vpack.c.bf16 %v188_v7, %v187_v6  ;;  %v190_v11 = vld [vmem:[#allocation5 + $0x38] sm:$0xff]  ;;  %v191_v13 = vld [vmem:[#allocation5 + $0x40] sm:$0xff]  ;;  %v192_v14 = vld [vmem:[#allocation5 + $0x48] sm:$0xff]  ;;  %p629_p4 = scmp.ne.s32.totalorder %s890_s17, %s628_s28  ;;  %s704_s3 = smov [#allocation7]  }
  0x59   : > { %464 = vmatpush3.bf16.msra.mxu0 %v461_v3  ;;  %501 = vmatpush3.bf16.msra.mxu1 %v461_v3  ;;  %v473_v12 = vpack.c.bf16 %v190_v11, %v189_v10  ;;  %v477_v15 = vpack.c.bf16 %v192_v14, %v191_v13  ;;  %v193_v16 = vld [vmem:[#allocation5 + $0x50] sm:$0xff]  ;;  %v194_v17 = vld [vmem:[#allocation5 + $0x58] sm:$0xff]  ;;  %v195_v19 = vld [vmem:[#allocation5 + $0x60] sm:$0xff]  ;;  %s632_s6 = sshll.u32 %s704_s3, 4  ;;  %s633_s6 = int_to_ptr.vmem [resolvable:$false] %s632_s6 }
  0x5a   : > { %466 = vmatprep.subr.bf16.mxu0 %v465_v5  ;;  %494 = vmatprep.subr.bf16.mxu1 %v465_v5  ;;  %v481_v18 = vpack.c.bf16 %v194_v17, %v193_v16  ;;  %v196_v20 = vld [vmem:[#allocation5 + $0x68] sm:$0xff]  ;;  %v197_v22 = vld [vmem:[#allocation5 + $0x70] sm:$0xff]  ;;  %v198_v23 = vld [vmem:[#allocation5 + $0x78] sm:$0xff]  ;;  %p630_p6 = pnand %p629_p4, %p816_p12  ;;  %s634_s7 = scalar_lea.vmem %s633_s6, 1024 }
  0x5b   : > { %455 = vmatprep.mubr.f32.mxu1 %v179_v9  ;;  %v485_v21 = vpack.c.bf16 %v196_v20, %v195_v19  ;;  %v489_v24 = vpack.c.bf16 %v198_v23, %v197_v22  ;;  %v180_v25 = vld [vmem:[%s873_s23 + $0x8] sm:$0xff]  ;;  %v182_v26 = vld [vmem:[%s873_s23 + $0x18] sm:$0xff]  ;;  %v181_v27 = vld [vmem:[%s873_s23 + $0x10] sm:$0xff]  ;;  %p635_p10 = scmp.lt.s32.totalorder %s890_s17, %s633_s6  ;;  %p636_p13 = scmp.lt.s32.totalorder %s634_s7, %s628_s28 }
  0x5c   : > { %p631_p8 = pneg %p630_p6 }
  0x5d   : > { %468 = vmatpush3.bf16.msra.mxu0 %v465_v5  ;;  %502 = vmatpush3.bf16.msra.mxu1 %v465_v5  ;;  %p637_p3 = por %p636_p13, %p635_p10 }
  0x5e   : > { %470 = vmatprep.subr.bf16.mxu0 %v469_v8  ;;  %495 = vmatprep.subr.bf16.mxu1 %v469_v8 }
  0x5f   : > { %p638_p7 = pnand %p637_p3, %p631_p8 }
  0x61   : > { %472 = vmatpush3.bf16.msra.mxu0 %v469_v8  ;;  %503 = vmatpush3.bf16.msra.mxu1 %v469_v8 }
  0x62   : > { %474 = vmatprep.subr.bf16.mxu0 %v473_v12  ;;  %496 = vmatprep.subr.bf16.mxu1 %v473_v12 }
  0x65   : > { %476 = vmatpush3.bf16.msra.mxu0 %v473_v12  ;;  %504 = vmatpush3.bf16.msra.mxu1 %v473_v12 }
  0x66   : > { %478 = vmatprep.subr.bf16.mxu0 %v477_v15  ;;  %497 = vmatprep.subr.bf16.mxu1 %v477_v15 }
  0x69   : > { %480 = vmatpush3.bf16.msra.mxu0 %v477_v15  ;;  %505 = vmatpush3.bf16.msra.mxu1 %v477_v15 }
  0x6a   : > { %482 = vmatprep.subr.bf16.mxu0 %v481_v18  ;;  %498 = vmatprep.subr.bf16.mxu1 %v481_v18 }
  0x6d   : > { %484 = vmatpush3.bf16.msra.mxu0 %v481_v18  ;;  %506 = vmatpush3.bf16.msra.mxu1 %v481_v18 }
  0x6e   : > { %486 = vmatprep.subr.bf16.mxu0 %v485_v21  ;;  %499 = vmatprep.subr.bf16.mxu1 %v485_v21 }
  0x71   : > { %488 = vmatpush3.bf16.msra.mxu0 %v485_v21  ;;  %507 = vmatpush3.bf16.msra.mxu1 %v485_v21 }
  0x72   : > { %490 = vmatprep.subr.bf16.mxu0 %v489_v24  ;;  %500 = vmatprep.subr.bf16.mxu1 %v489_v24 }
  0x75   : > { %492 = vmatpush3.bf16.msra.mxu0 %v489_v24  ;;  %508 = vmatpush3.bf16.msra.mxu1 %v489_v24 }
  0x78   : > { %456 = vmatmul.mubr.f32.vlgmr.msra.gmra.mrb[0].mxu0 %v180_v25  ;;  %459 = vmatmul.mubr.f32.vlgmr.msra.gmra.mrb[0].mxu1 %v182_v26 }
  0x79   : > { %458 = vmatprep.mubr.f32.mxu0 %v181_v27 }
 0x14b   : > { %v457_v28 = vpop.f32.mrb[0].mxu0  ;;  %v460_v29 = vpop.f32.mrb[0].mxu1 }
 0x14c   : > { %v271_v30 = vadd.f32 %v457_v28, %v180_v25  ;;  %v281_v31 = vadd.f32 %v460_v29, %v182_v26  ;;  %v265_v32 = vpop.f32.mrb[1].mxu0  ;;  %v275_v33 = vpop.f32.mrb[1].mxu1 }
 0x14d   : > { %v266_v34 = vadd.f32 %v265_v32, %v179_v9  ;;  %v276_v35 = vadd.f32 %v275_v33, %v181_v27 }
 0x14e   : > { %285 = vst [vmem:[%s176_s15 + $0x8] sm:$0xff] %v271_v30  ;;  %287 = vst [vmem:[%s176_s15 + $0x18] sm:$0xff] %v281_v31 }
 0x14f   : > { %284 = vst [vmem:[%s176_s15] sm:$0xff] %v266_v34  ;;  %286 = vst [vmem:[%s176_s15 + $0x10] sm:$0xff] %v276_v35 }
 0x150   : > { %641 = shalt.err (!%p638_p7)
}
 0x151   : > { %s642_s20 = scalar_lea.hbm %s895_s22, 512  ;;  %s646_s25 = scalar_lea.hbm %s941_s2, 1024 }
 0x152   : > { %p643_p9 = scmp.ne.s32.totalorder %s895_s22, %s642_s20  ;;  %p647_p5 = scmp.lt.u32.totalorder %s895_s22, %s941_s2 }
 0x153   : > { %p648_p11 = scmp.lt.u32.totalorder %s646_s25, %s642_s20  ;;  %p650_p4 = scmp.lt.u32.totalorder %s642_s20, %s895_s22 }
 0x154   : > { %p644_p1 = pnand %p643_p9, %p816_p12 }
 0x155   : > { %p649_p2 = por %p648_p11, %p647_p5 }
 0x156   : > { %p645_p0 = pneg %p644_p1 }
 0x157   : > { %p651_p6 = por %p650_p4, %p649_p2 }
 0x159   : > { %p652_p8 = pnand %p651_p6, %p645_p0 }
 0x15b   : > { %655 = shalt.err (!%p652_p8)
}
 0x15c   : > { %s705_s30 = smov 128   ;;  %s706_s23 = smov 8  }
 0x15d   : > { %515 = dma.vmem_to_hbm [thread:$0]  (%p816_p12), %s890_s17, 512, %s895_s22, %s289_s13, %s705_s30, %s705_s30, %s706_s23  }
 0x15e PF: > { %s317_s15 = sand.u32 1, %s686_s9   ;;  %p956_p10 = scmp.ne.s32.totalorder %s946_s16, 0 }
 0x15f   : > { %p957_p13 = scmp.ge.s32.totalorder %s698_s12, 2  ;;  %s318_s4 = scalar_lea.sflag [#allocation4], %s317_s15 }
 0x161   : > { %p526_p3 = pnand %p957_p13, %p956_p10 }
 0x163   : > { %681 = dma.done.wait (!%p526_p3), %s318_s4, 512  }
 0x164   : > { %683 = vsyncadd (!%p526_p3), %s318_s4, 4294966784  ;;  %p16_p7 = scmp.ge.s32.totalorder %s778_s21, 4   ;;  %s958_s9 = smov %s690_s10 }
 0x165   : > { %s959_s10 = smov %s694_s11  ;;  %s960_s11 = smov %s812_s8 }
 0x166   : > { %s961_s12 = smov %s778_s21  ;;  %18 = sbr.rel (!%p16_p7) target bundleno = 6 (0x6), region = 77 }
 0x16d   :  { %323 = vsyncpa [#allocation3], 1 }
 0x16e   :  { %325 = vsyncpa [#allocation3 + $0x1], 1 }
 0x16f   :  { %326 = vsyncpa [#allocation6], 1 }
 0x170   :  { %327 = vsyncpa [#allocation4], 1 }
 0x171   :  { %329 = vsyncpa [#allocation4 + $0x1], 1 }

</bundles_post_ra>
